<compile_context>
chip_gen: v6e
topology: v6e:2x2x1
jax: 0.10.0
libtpu: 0.0.40
codegen_flags: <defaults>
</compile_context>

<pallas_src>
import functools

import jax
import jax.numpy as jnp
from jax.experimental import pallas as pl
from jax.experimental.pallas import tpu as pltpu

_LANE = 128
_NEG_BIG = -1e30        # bias for padded class lanes: exp(-1e30 - m) == 0 in f32
_SINGLE_TILE_B = 512    # below this, one fat tile (per-step overhead dominates)
_MAX_BLOCK_B = 2048     # cap per-tile rows for production batch sizes


def _round_up(n, m):
    return ((n + m - 1) // m) * m


def _cdiv(a, b):
    return -(-a // b)


def _pad2(a, rows, cols, fill=0.0):
    r, c = a.shape
    return jnp.pad(a, ((0, rows - r), (0, cols - c)), constant_values=fill)


def _pick_block_b(B):
    """Batch tile size: one fat tile for small B; for large B an even number of
    near-equal tiles so v7x's 2 TensorCores stay balanced (dimension_semantics
    'parallel' shards the grid axis across cores)."""
    if B <= _SINGLE_TILE_B:
        return _round_up(B, 16)
    n_tiles = 2 * max(1, _cdiv(B, 2 * _MAX_BLOCK_B))
    return _round_up(_cdiv(B, n_tiles), 16)


def prepare_params(w1, b1, w2, b2, w3, b3, dot_dtype=jnp.bfloat16):
    """One-time parameter prep (the deployed parameter format).

    Pads hidden / class dims to multiples of 128 lanes and casts weights to the
    MXU dtype.  The contraction dim F (=41) of w1 is NOT padded — x is fed
    unpadded.  Run once at init so the per-call wrapper stays one pallas_call.
    """
    F, H1 = w1.shape
    H2 = w2.shape[1]
    O = w3.shape[1]
    H1p, H2p, Op = (_round_up(d, _LANE) for d in (H1, H2, O))

    w1p = _pad2(w1, F, H1p).astype(dot_dtype)
    w2p = _pad2(w2, H1p, H2p).astype(dot_dtype)
    w3p = _pad2(w3, H2p, Op).astype(dot_dtype)
    b1p = _pad2(b1.reshape(1, H1), 1, H1p).astype(jnp.float32)
    b2p = _pad2(b2.reshape(1, H2), 1, H2p).astype(jnp.float32)
    # Padded class lanes get a huge negative bias -> zero softmax weight.
    b3p = _pad2(b3.reshape(1, O), 1, Op, fill=_NEG_BIG).astype(jnp.float32)
    return (w1p, b1p, w2p, b2p, w3p, b3p)


def _mlp_kernel(x_ref, w1_ref, b1_ref, w2_ref, b2_ref, w3_ref, b3_ref, o_ref):
    dot_dt = w1_ref.dtype
    # bf16 cast done in-kernel (VPU); x DMA'd as raw, unpadded f32.
    x = x_ref[...].astype(dot_dt)
    # layer 1: (TB, 41) @ (41, H1p), f32 accumulation on the MXU
    h1 = jnp.dot(x, w1_ref[...], preferred_element_type=jnp.float32) + b1_ref[...]
    h1 = jnp.maximum(h1, 0.0)                                   # ReLU (f32)
    # layer 2
    h2 = jnp.dot(h1.astype(dot_dt), w2_ref[...],
                 preferred_element_type=jnp.float32) + b2_ref[...]
    h2 = jnp.maximum(h2, 0.0)                                   # ReLU (f32)
    # output layer; padded classes carry a -1e30 bias -> exact softmax over 4
    logits = jnp.dot(h2.astype(dot_dt), w3_ref[...],
                     preferred_element_type=jnp.float32) + b3_ref[...]
    # softmax over dim=1, numerically stabilized, f32 epilogue
    m = jnp.max(logits, axis=-1, keepdims=True)
    e = jnp.exp(logits - m)
    inv = pl.reciprocal(jnp.sum(e, axis=-1, keepdims=True), approx=True)
    o_ref[...] = (e * inv).astype(o_ref.dtype)                  # bf16 writeback


@functools.partial(jax.jit, static_argnames=("num_classes", "block_b"))
def classifier_mlp(x, params, num_classes, block_b=None):
    w1p, b1p, w2p, b2p, w3p, b3p = params
    B, F = x.shape
    Op = w3p.shape[1]

    if block_b is None:
        block_b = _pick_block_b(B)
    grid = (_cdiv(B, block_b),)
    Bp = grid[0] * block_b
    # Batch-only pad of the narrow f32 x when B % block_b != 0 (no lane pad,
    # no dtype cast); elided entirely when the tile divides the batch.
    xp = x if Bp == B else jnp.pad(x, ((0, Bp - B), (0, 0)))

    full = lambda shape: pl.BlockSpec(shape, lambda i: (0,) * len(shape))
    out_p = pl.pallas_call(
        _mlp_kernel,
        out_shape=jax.ShapeDtypeStruct((Bp, Op), jnp.bfloat16),
        grid_spec=pltpu.PrefetchScalarGridSpec(
            num_scalar_prefetch=0,
            grid=grid,
            in_specs=[
                pl.BlockSpec((block_b, F), lambda i: (i, 0)),   # unpadded f32 x
                full(w1p.shape), full(b1p.shape),               # layer 1
                full(w2p.shape), full(b2p.shape),               # layer 2
                full(w3p.shape), full(b3p.shape),               # output layer
            ],
            out_specs=pl.BlockSpec((block_b, Op), lambda i: (i, 0)),
        ),
        compiler_params=pltpu.CompilerParams(
            dimension_semantics=("parallel",)),
    )(xp, w1p, b1p, w2p, b2p, w3p, b3p)
    # Tiny slice / cast outside the kernel (B x num_classes elements only).
    return out_p[:B, :num_classes].astype(jnp.float32)


def _init_linear(key, fan_in, fan_out):
    # Deterministic init mimicking nn.Linear's U(-1/sqrt(fan_in), 1/sqrt(fan_in)).
    kw, kb = jax.random.split(key)
    bound = 1.0 / jnp.sqrt(jnp.float32(fan_in))
    w = jax.random.uniform(kw, (fan_in, fan_out), jnp.float32, -bound, bound)
    b = jax.random.uniform(kb, (1, fan_out), jnp.float32, -bound, bound)
    return w, b


if __name__ == "__main__":
    # Shapes implied by the module: input_dim = 41 features (kddcup minus label),
    # hidden_1 / hidden_2 are free hyperparams, out = 4 classes.
    B, INPUT_DIM, HIDDEN_1, HIDDEN_2, OUT = 16, 41, 32, 32, 4

    root = jax.random.PRNGKey(0)
    kx, k1, k2, k3 = jax.random.split(root, 4)

    x = jax.random.normal(kx, (B, INPUT_DIM), jnp.float32)
    w1, b1 = _init_linear(k1, INPUT_DIM, HIDDEN_1)
    w2, b2 = _init_linear(k2, HIDDEN_1, HIDDEN_2)
    w3, b3 = _init_linear(k3, HIDDEN_2, OUT)

    # One-time parameter prep (deployed format), then a single-pallas_call forward.
    params = prepare_params(w1, b1, w2, b2, w3, b3)
    params = jax.block_until_ready(params)

    out = classifier_mlp(x, params, num_classes=OUT)
    out = jax.block_until_ready(out)
    assert out.shape == (B, OUT)

    # Reference 1: same bf16-dot / f32-accumulate math as the kernel.
    d = jnp.bfloat16
    f32 = jnp.float32
    h1 = jnp.maximum(jnp.dot(x.astype(d), w1.astype(d), preferred_element_type=f32) + b1, 0.0)
    h2 = jnp.maximum(jnp.dot(h1.astype(d), w2.astype(d), preferred_element_type=f32) + b2, 0.0)
    ref_bf16 = jax.nn.softmax(
        jnp.dot(h2.astype(d), w3.astype(d), preferred_element_type=f32) + b3, axis=1)
    assert jnp.allclose(out, ref_bf16, atol=2e-2), float(jnp.max(jnp.abs(out - ref_bf16)))

    # Reference 2: full-f32 PyTorch-equivalent forward (looser tolerance:
    # bf16 dots + approx reciprocal + bf16 writeback).
    h1f = jnp.maximum(x @ w1 + b1, 0.0)
    h2f = jnp.maximum(h1f @ w2 + b2, 0.0)
    ref_f32 = jax.nn.softmax(h2f @ w3 + b3, axis=1)
    assert jnp.allclose(out, ref_f32, atol=3e-2), float(jnp.max(jnp.abs(out - ref_f32)))

    # Rows are valid probability distributions (up to bf16 + approx-rcp error).
    assert jnp.allclose(jnp.sum(out, axis=1), 1.0, atol=2e-2)

    print("KERNEL_OK")
</pallas_src>

<mosaic_0001>
module attributes {stable_mosaic.version = 11 : i64} {
  func.func @_mlp_kernel(%arg0: i32, %arg1: memref<16x41xf32, #tpu.memory_space<vmem>>, %arg2: memref<41x128xbf16, #tpu.memory_space<vmem>>, %arg3: memref<1x128xf32, #tpu.memory_space<vmem>>, %arg4: memref<128x128xbf16, #tpu.memory_space<vmem>>, %arg5: memref<1x128xf32, #tpu.memory_space<vmem>>, %arg6: memref<128x128xbf16, #tpu.memory_space<vmem>>, %arg7: memref<1x128xf32, #tpu.memory_space<vmem>>, %arg8: memref<16x128xbf16, #tpu.memory_space<vmem>>) attributes {dimension_semantics = [#tpu.dimension_semantics<parallel>], iteration_bounds = array<i64: 1>, scalar_prefetch = 0 : i64, scratch_operands = 0 : i64, tpu.core_type = #tpu.core_type<tc>, window_params = [{transform_indices = @transform_0, window_bounds = array<i64: 16, 41>}, {pipeline_mode = #tpu.pipeline_mode<synchronous>, transform_indices = @transform_1, window_bounds = array<i64: 41, 128>}, {pipeline_mode = #tpu.pipeline_mode<synchronous>, transform_indices = @transform_2, window_bounds = array<i64: 1, 128>}, {pipeline_mode = #tpu.pipeline_mode<synchronous>, transform_indices = @transform_3, window_bounds = array<i64: 128, 128>}, {pipeline_mode = #tpu.pipeline_mode<synchronous>, transform_indices = @transform_4, window_bounds = array<i64: 1, 128>}, {pipeline_mode = #tpu.pipeline_mode<synchronous>, transform_indices = @transform_5, window_bounds = array<i64: 128, 128>}, {pipeline_mode = #tpu.pipeline_mode<synchronous>, transform_indices = @transform_6, window_bounds = array<i64: 1, 128>}, {transform_indices = @transform_7, window_bounds = array<i64: 16, 128>}]} {
    %c0 = arith.constant 0 : index
    %c0_0 = arith.constant 0 : index
    %0 = vector.load %arg1[%c0, %c0_0] : memref<16x41xf32, #tpu.memory_space<vmem>>, vector<16x41xf32>
    %1 = arith.truncf %0 : vector<16x41xf32> to vector<16x41xbf16>
    %c0_1 = arith.constant 0 : index
    %c0_2 = arith.constant 0 : index
    %2 = vector.load %arg2[%c0_1, %c0_2] : memref<41x128xbf16, #tpu.memory_space<vmem>>, vector<41x128xbf16>
    %cst = arith.constant dense<0.000000e+00> : vector<16x128xf32>
    %3 = tpu.matmul %1, %2, %cst {dimension_numbers = #tpu.dot_dimension_numbers<[1], [0], [0], [1], [0, 0, 1, 1], [], []>} : vector<16x41xbf16>, vector<41x128xbf16>, vector<16x128xf32> -> vector<16x128xf32>
    %c0_3 = arith.constant 0 : index
    %c0_4 = arith.constant 0 : index
    %4 = vector.load %arg3[%c0_3, %c0_4] : memref<1x128xf32, #tpu.memory_space<vmem>>, vector<1x128xf32>
    %5 = vector.broadcast %4 : vector<1x128xf32> to vector<16x128xf32>
    %6 = arith.addf %3, %5 : vector<16x128xf32>
    %cst_5 = arith.constant 0.000000e+00 : f32
    %7 = vector.broadcast %cst_5 : f32 to vector<16x128xf32>
    %8 = arith.maximumf %6, %7 : vector<16x128xf32>
    %9 = arith.truncf %8 : vector<16x128xf32> to vector<16x128xbf16>
    %c0_6 = arith.constant 0 : index
    %c0_7 = arith.constant 0 : index
    %10 = vector.load %arg4[%c0_6, %c0_7] : memref<128x128xbf16, #tpu.memory_space<vmem>>, vector<128x128xbf16>
    %cst_8 = arith.constant dense<0.000000e+00> : vector<16x128xf32>
    %11 = tpu.matmul %9, %10, %cst_8 {dimension_numbers = #tpu.dot_dimension_numbers<[1], [0], [0], [1], [0, 0, 1, 1], [], []>} : vector<16x128xbf16>, vector<128x128xbf16>, vector<16x128xf32> -> vector<16x128xf32>
    %c0_9 = arith.constant 0 : index
    %c0_10 = arith.constant 0 : index
    %12 = vector.load %arg5[%c0_9, %c0_10] : memref<1x128xf32, #tpu.memory_space<vmem>>, vector<1x128xf32>
    %13 = vector.broadcast %12 : vector<1x128xf32> to vector<16x128xf32>
    %14 = arith.addf %11, %13 : vector<16x128xf32>
    %cst_11 = arith.constant 0.000000e+00 : f32
    %15 = vector.broadcast %cst_11 : f32 to vector<16x128xf32>
    %16 = arith.maximumf %14, %15 : vector<16x128xf32>
    %17 = arith.truncf %16 : vector<16x128xf32> to vector<16x128xbf16>
    %c0_12 = arith.constant 0 : index
    %c0_13 = arith.constant 0 : index
    %18 = vector.load %arg6[%c0_12, %c0_13] : memref<128x128xbf16, #tpu.memory_space<vmem>>, vector<128x128xbf16>
    %cst_14 = arith.constant dense<0.000000e+00> : vector<16x128xf32>
    %19 = tpu.matmul %17, %18, %cst_14 {dimension_numbers = #tpu.dot_dimension_numbers<[1], [0], [0], [1], [0, 0, 1, 1], [], []>} : vector<16x128xbf16>, vector<128x128xbf16>, vector<16x128xf32> -> vector<16x128xf32>
    %c0_15 = arith.constant 0 : index
    %c0_16 = arith.constant 0 : index
    %20 = vector.load %arg7[%c0_15, %c0_16] : memref<1x128xf32, #tpu.memory_space<vmem>>, vector<1x128xf32>
    %21 = vector.broadcast %20 : vector<1x128xf32> to vector<16x128xf32>
    %22 = arith.addf %19, %21 : vector<16x128xf32>
    %cst_17 = arith.constant dense<0xFF800000> : vector<16xf32>
    %23 = vector.multi_reduction <maximumf>, %22, %cst_17 [1] : vector<16x128xf32> to vector<16xf32>
    %24 = vector.shape_cast %23 : vector<16xf32> to vector<16x1xf32>
    %25 = vector.broadcast %24 : vector<16x1xf32> to vector<16x128xf32>
    %26 = arith.subf %22, %25 : vector<16x128xf32>
    %27 = math.exp %26 : vector<16x128xf32>
    %cst_18 = arith.constant dense<0.000000e+00> : vector<16xf32>
    %28 = vector.multi_reduction <add>, %27, %cst_18 [1] : vector<16x128xf32> to vector<16xf32>
    %29 = vector.shape_cast %28 : vector<16xf32> to vector<16x1xf32>
    %30 = tpu.reciprocal %29 {approx = true} : vector<16x1xf32> -> vector<16x1xf32>
    %31 = vector.broadcast %30 : vector<16x1xf32> to vector<16x128xf32>
    %32 = arith.mulf %27, %31 : vector<16x128xf32>
    %33 = arith.truncf %32 : vector<16x128xf32> to vector<16x128xbf16>
    %c0_19 = arith.constant 0 : index
    %c0_20 = arith.constant 0 : index
    %34 = vector.load %arg8[%c0_19, %c0_20] : memref<16x128xbf16, #tpu.memory_space<vmem>>, vector<16x128xbf16>
    tpu.vector_store %arg8[%c0_19, %c0_20], %33 {strides = array<i32>} : memref<16x128xbf16, #tpu.memory_space<vmem>>, vector<16x128xbf16>,
    return
  }
  func.func @transform_0(%arg0: i32) -> (i32, i32) {
    %c0_i32 = arith.constant 0 : i32
    %c0_i32_0 = arith.constant 0 : i32
    return %arg0, %c0_i32 : i32, i32
  }
  func.func @transform_1(%arg0: i32) -> (i32, i32) {
    %c0_i32 = arith.constant 0 : i32
    %c0_i32_0 = arith.constant 0 : i32
    %c0_i32_1 = arith.constant 0 : i32
    return %c0_i32, %c0_i32_0 : i32, i32
  }
  func.func @transform_2(%arg0: i32) -> (i32, i32) {
    %c0_i32 = arith.constant 0 : i32
    %c0_i32_0 = arith.constant 0 : i32
    %c0_i32_1 = arith.constant 0 : i32
    return %c0_i32, %c0_i32_0 : i32, i32
  }
  func.func @transform_3(%arg0: i32) -> (i32, i32) {
    %c0_i32 = arith.constant 0 : i32
    %c0_i32_0 = arith.constant 0 : i32
    %c0_i32_1 = arith.constant 0 : i32
    return %c0_i32, %c0_i32_0 : i32, i32
  }
  func.func @transform_4(%arg0: i32) -> (i32, i32) {
    %c0_i32 = arith.constant 0 : i32
    %c0_i32_0 = arith.constant 0 : i32
    %c0_i32_1 = arith.constant 0 : i32
    return %c0_i32, %c0_i32_0 : i32, i32
  }
  func.func @transform_5(%arg0: i32) -> (i32, i32) {
    %c0_i32 = arith.constant 0 : i32
    %c0_i32_0 = arith.constant 0 : i32
    %c0_i32_1 = arith.constant 0 : i32
    return %c0_i32, %c0_i32_0 : i32, i32
  }
  func.func @transform_6(%arg0: i32) -> (i32, i32) {
    %c0_i32 = arith.constant 0 : i32
    %c0_i32_0 = arith.constant 0 : i32
    %c0_i32_1 = arith.constant 0 : i32
    return %c0_i32, %c0_i32_0 : i32, i32
  }
  func.func @transform_7(%arg0: i32) -> (i32, i32) {
    %c0_i32 = arith.constant 0 : i32
    %c0_i32_0 = arith.constant 0 : i32
    return %arg0, %c0_i32 : i32, i32
  }
}

</mosaic_0001>

<bundles_post_ra>
// kernel: classifier_mlp.1
= control target key start
LH: loop header
LB: loop body
LE: loop exit
PB: predicated region body
PF: predicated region fallthrough
CT: control target
= control target key end

     0   :  { %12 = vsyncpa [#allocation3], 0  ;;  %s769_s0 = inlined_call_operand.hbm [shape: f32[16,41], index: 0, kind: input, shape index: {}]   ;;  %s770_s1 = inlined_call_operand.hbm [shape: bf16[41,128], index: 1, kind: input, shape index: {}]   ;;  %s771_s2 = inlined_call_operand.vmem [shape: f32[1,128], index: 2, kind: input, shape index: {}]   ;;  %s772_s3 = inlined_call_operand.hbm [shape: bf16[128,128], index: 3, kind: input, shape index: {}]   ;;  %s773_s4 = inlined_call_operand.vmem [shape: f32[1,128], index: 4, kind: input, shape index: {}]   ;;  %s774_s5 = inlined_call_operand.hbm [shape: bf16[128,128], index: 5, kind: input, shape index: {}]   ;;  %s775_s6 = inlined_call_operand.vmem [shape: f32[1,128], index: 6, kind: input, shape index: {}]   ;;  %s776_s7 = inlined_call_operand.vmem [shape: bf16[16,128], index: 7, kind: output, shape index: {}]  }
   0x1   :  { %13 = vsyncpa [#allocation5], 0 }
   0x2   :  { %14 = vsyncpa [#allocation8], 0  ;;  %s660_s24 = smov [#allocation4]  }
   0x3   :  { %s32_s25 = sshll.u32 %s660_s24, 4  ;;  %s33_s25 = int_to_ptr.vmem [resolvable:$true] %s32_s25 }
   0x4   :  { %s582_s26 = scalar_lea.vmem %s33_s25, 384  ;;  %p587_p1 = scmp.lt.s32.totalorder %s33_s25, %s33_s25 }
   0x5   :  { %p583_p0 = scmp.ne.s32.totalorder %s33_s25, %s582_s26  ;;  %p588_p2 = scmp.lt.s32.totalorder %s582_s26, %s582_s26 }
   0x7   :  { %p589_p3 = por %p588_p2, %p587_p1 }
   0x9   :  { %p590_p4 = pnand %p589_p3, %p583_p0 }
   0xb   :  { %593 = shalt.err (!%p590_p4)
}
   0xc   :  { %s661_s27 = smov 64   ;;  %s662_s28 = smov 4  }
   0xd   :  { %38 = dma.hbm_to_vmem [thread:$0]  %s770_s1, 384, %s33_s25, [#allocation5], %s661_s27, %s661_s27, %s662_s28  }
   0xe   :  { %s663_s8 = smov [#allocation2]  }
   0xf   :  { %s20_s9 = sshll.u32 %s663_s8, 4  ;;  %s21_s9 = int_to_ptr.vmem [resolvable:$true] %s20_s9 }
  0x10   :  { %s602_s10 = scalar_lea.vmem %s21_s9, 256  ;;  %p607_p6 = scmp.lt.s32.totalorder %s21_s9, %s21_s9 }
  0x11   :  { %p603_p5 = scmp.ne.s32.totalorder %s21_s9, %s602_s10  ;;  %p608_p7 = scmp.lt.s32.totalorder %s602_s10, %s602_s10 }
  0x13   :  { %p609_p8 = por %p608_p7, %p607_p6 }
  0x15   :  { %p610_p9 = pnand %p609_p8, %p603_p5 }
  0x17   :  { %613 = shalt.err (!%p610_p9)
}
  0x18   :  { %s664_s11 = smov 128   ;;  %s665_s12 = smov 8  }
  0x19   :  { %26 = dma.hbm_to_vmem [thread:$0]  %s769_s0, 256, %s21_s9, [#allocation3], %s664_s11, %s664_s11, %s665_s12  }
  0x1a   :  { %s666_s15 = smov [#allocation6]   ;;  %s667_s17 = smov [#allocation7]  }
  0x1b   :  { %s46_s16 = sshll.u32 %s666_s15, 4  ;;  %s60_s1 = sshll.u32 %s667_s17, 4  ;;  %s47_s16 = int_to_ptr.vmem [resolvable:$true] %s46_s16  ;;  %s61_s1 = int_to_ptr.vmem [resolvable:$true] %s60_s1 }
  0x1c   :  { %s622_s18 = scalar_lea.vmem %s47_s16, 1024  ;;  %p627_p11 = scmp.lt.s32.totalorder %s47_s16, %s47_s16 }
  0x1d   :  { %p623_p10 = scmp.ne.s32.totalorder %s47_s16, %s622_s18  ;;  %p628_p12 = scmp.lt.s32.totalorder %s622_s18, %s622_s18 }
  0x1f   :  { %p629_p13 = por %p628_p12, %p627_p11 }
  0x21   :  { %p630_p0 = pnand %p629_p13, %p623_p10 }
  0x23   :  { %633 = shalt.err (!%p630_p0)
}
  0x24   :  { %52 = dma.hbm_to_vmem [thread:$0]  %s772_s3, 1024, %s47_s16, [#allocation5], %s661_s27, %s661_s27, %s662_s28  }
  0x25   :  { %s642_s0 = scalar_lea.vmem %s61_s1, 1024  ;;  %p647_p2 = scmp.lt.s32.totalorder %s61_s1, %s61_s1 }
  0x26   :  { %p643_p1 = scmp.ne.s32.totalorder %s61_s1, %s642_s0  ;;  %p648_p3 = scmp.lt.s32.totalorder %s642_s0, %s642_s0 }
  0x28   :  { %p649_p4 = por %p648_p3, %p647_p2 }
  0x2a   :  { %p650_p5 = pnand %p649_p4, %p643_p1 }
  0x2c   :  { %653 = shalt.err (!%p650_p5)
}
  0x2d   :  { %66 = dma.hbm_to_vmem [thread:$0]  %s774_s5, 1024, %s61_s1, [#allocation8], %s661_s27, %s661_s27, %s662_s28  }
  0x2e   :  { %654 = dma.done.wait [#allocation3], 256  }
  0x2f   :  { %655 = vsyncadd [#allocation3], 4294967040 }
  0x30   :  { %656 = dma.done.wait [#allocation5], 1408  }
  0x31   :  { %657 = vsyncadd [#allocation5], 4294965888 }
  0x32   :  { %658 = dma.done.wait [#allocation8], 1024  }
  0x33   :  { %659 = vsyncadd [#allocation8], 4294966272  ;;  %vm119_vm0 = vcmask 1043456   ;;  %v668_v0 = vmov 0.0   ;;  %vm669_vm1 = vmmov 0   ;;  %vm120_vm2 = vcmask 1044480  }
  0x34   :  { %486 = vmatprep.subr.bf16.mxu0 %v668_v0  ;;  %496 = vmatprep.subr.bf16.mxu1 %v668_v0  ;;  %v670_v1 = vmov 65535   ;;  %v547_v4 = vld [vmem:[#allocation4 + $0x10] sm:$0x1f]   ;;  %v548_v6 = vld [vmem:[#allocation4 + $0x8] sm:$0xff]   ;;  %v549_v8 = vld [vmem:[#allocation4] sm:$0xff]   ;;  %vm115_vm3 = vcmask 334848  }
  0x35   :  { %492 = vmatprep.mubr.msk.bf16.mxu0 %vm669_vm1, %v668_v0  ;;  %512 = vmatprep.mubr.msk.bf16.mxu1 %vm669_vm1, %v668_v0  ;;  %v121_v2 = vsel %vm119_vm0, 4294967295, %v670_v1  ;;  %v550_v7 = vld [vmem:[#allocation6 + $0x38] sm:$0xff]   ;;  %v551_v9 = vld [vmem:[#allocation6 + $0x30] sm:$0xff]   ;;  %v83_v11 = vld [vmem:[#allocation2 + $0x8] sm:$0xff] }
  0x36   :  { %v122_v3 = vsel %vm120_vm2, %v121_v2, 0  ;;  %497 = vmatpush3.bf16.msra.mxu1 %v550_v7  ;;  %v82_v10 = vld [vmem:[#allocation2] sm:$0xff]  ;;  %v552_v12 = vld [vmem:[#allocation6 + $0x28] sm:$0xff]   ;;  %v553_v14 = vld [vmem:[#allocation6 + $0x20] sm:$0xff]  }
  0x37   :  { %v124_v5 = vand.u32 %v547_v4, %v122_v3  ;;  %498 = vmatprep.subr.bf16.mxu1 %v668_v0  ;;  %v84_v13 = vpack.c.bf16 %v83_v11, %v82_v10  ;;  %v554_v15 = vld [vmem:[#allocation6 + $0x18] sm:$0xff]   ;;  %v555_v16 = vld [vmem:[#allocation6 + $0x10] sm:$0xff]   ;;  %v556_v17 = vld [vmem:[#allocation6 + $0x8] sm:$0xff]  }
  0x38   :  { %v557_v18 = vld [vmem:[#allocation6] sm:$0xff]   ;;  %v558_v19 = vld [vmem:[#allocation7 + $0x38] sm:$0xff]   ;;  %v559_v20 = vld [vmem:[#allocation7 + $0x30] sm:$0xff]  }
  0x39   :  { %487 = vmatpush3.bf16.msra.mxu0 %v124_v5  ;;  %v560_v21 = vld [vmem:[#allocation7 + $0x28] sm:$0xff]   ;;  %v561_v22 = vld [vmem:[#allocation7 + $0x20] sm:$0xff]   ;;  %v562_v23 = vld [vmem:[#allocation7 + $0x18] sm:$0xff]  }
  0x3a   :  { %488 = vmatprep.subr.bf16.mxu0 %v668_v0  ;;  %499 = vmatpush3.bf16.msra.mxu1 %v551_v9  ;;  %v432_v24 = vld [vmem:[%s771_s2] ss:$0 sm:$0xff]  ;;  %v563_v34 = vld [vmem:[#allocation7 + $0x10] sm:$0xff]   ;;  %v564_v35 = vld [vmem:[#allocation7 + $0x8] sm:$0xff]  }
  0x3b   :  { %500 = vmatprep.subr.bf16.mxu1 %v668_v0  ;;  %v565_v36 = vld [vmem:[#allocation7] sm:$0xff]   ;;  %v437_v37 = vld [vmem:[%s773_s4] ss:$0 sm:$0xff] }
  0x3c   :  { %v446_v47 = vld [vmem:[%s775_s6] ss:$0 sm:$0xff] }
  0x3d   :  { %489 = vmatpush3.bf16.msra.mxu0 %v548_v6 }
  0x3e   :  { %490 = vmatprep.subr.bf16.mxu0 %v668_v0  ;;  %501 = vmatpush3.bf16.msra.mxu1 %v552_v12 }
  0x3f   :  { %502 = vmatprep.subr.bf16.mxu1 %v668_v0 }
  0x41   :  { %491 = vmatpush3.bf16.msra.mxu0 %v549_v8 }
  0x42   :  { %516 = vmatprep.subr.bf16.mxu0 %v668_v0  ;;  %503 = vmatpush3.bf16.msra.mxu1 %v553_v14 }
  0x43   :  { %504 = vmatprep.subr.bf16.mxu1 %v668_v0 }
  0x44   :  { %493 = vmatmul.mubr.msk.bf16.vlgmr.msra.gmra.mxu0 %vm115_vm3, %v84_v13 }
  0x45   :  { %532 = vmatprep.mubr.msk.bf16.mxu0 %vm669_vm1, %v668_v0  ;;  %517 = vmatpush3.bf16.msra.mxu0 %v558_v19 }
  0x46   :  { %505 = vmatpush3.bf16.msra.mxu1 %v554_v15  ;;  %518 = vmatprep.subr.bf16.mxu0 %v668_v0 }
  0x47   :  { %506 = vmatprep.subr.bf16.mxu1 %v668_v0 }
  0x49   :  { %519 = vmatpush3.bf16.msra.mxu0 %v559_v20 }
  0x4a   :  { %507 = vmatpush3.bf16.msra.mxu1 %v555_v16  ;;  %520 = vmatprep.subr.bf16.mxu0 %v668_v0 }
  0x4b   :  { %508 = vmatprep.subr.bf16.mxu1 %v668_v0 }
  0x4d   :  { %521 = vmatpush3.bf16.msra.mxu0 %v560_v21 }
  0x4e   :  { %509 = vmatpush3.bf16.msra.mxu1 %v556_v17  ;;  %522 = vmatprep.subr.bf16.mxu0 %v668_v0 }
  0x4f   :  { %510 = vmatprep.subr.bf16.mxu1 %v668_v0 }
  0x51   :  { %523 = vmatpush3.bf16.msra.mxu0 %v561_v22 }
  0x52   :  { %511 = vmatpush3.bf16.msra.mxu1 %v557_v18  ;;  %524 = vmatprep.subr.bf16.mxu0 %v668_v0 }
  0x55   :  { %525 = vmatpush3.bf16.msra.mxu0 %v562_v23 }
  0x56   :  { %526 = vmatprep.subr.bf16.mxu0 %v668_v0 }
  0x59   :  { %527 = vmatpush3.bf16.msra.mxu0 %v563_v34 }
  0x5a   :  { %528 = vmatprep.subr.bf16.mxu0 %v668_v0 }
  0x5d   :  { %529 = vmatpush3.bf16.msra.mxu0 %v564_v35 }
  0x5e   :  { %530 = vmatprep.subr.bf16.mxu0 %v668_v0 }
  0x61   :  { %531 = vmatpush3.bf16.msra.mxu0 %v565_v36 }
 0x104   :  { %v160_v25 = vpop.f32.mrf.mxu0 }
 0x105   :  { %v161_v27 = vadd.f32 %v432_v24, %v160_v25 }
 0x106   :  { %v494_v26 = vpop.f32.mrf.mxu0 }
 0x107   :  { %v167_v31 = vmax.f32 %v161_v27, 0.0 }
 0x108   :  { %v163_v28 = vpop.f32.mrf.mxu0 }
 0x109   :  { %v164_v29 = vadd.f32 %v432_v24, %v163_v28 }
 0x10a   :  { %v495_v30 = vpop.f32.mrf.mxu0 }
 0x10b   :  { %v168_v32 = vmax.f32 %v164_v29, 0.0 }
 0x10d   :  { %v169_v33 = vpack.c.bf16 %v168_v32, %v167_v31 }
 0x10f   :  { %513 = vmatmul.mubr.bf16.vlgmr.msra.gmra.mxu1 %v169_v33 }
 0x1cf   :  { %v275_v38 = vpop.f32.mrf.mxu1 }
 0x1d0   :  { %v276_v40 = vadd.f32 %v437_v37, %v275_v38 }
 0x1d1   :  { %v514_v39 = vpop.f32.mrf.mxu1 }
 0x1d2   :  { %v282_v44 = vmax.f32 %v276_v40, 0.0 }
 0x1d3   :  { %v278_v41 = vpop.f32.mrf.mxu1 }
 0x1d4   :  { %v279_v42 = vadd.f32 %v437_v37, %v278_v41 }
 0x1d5   :  { %v515_v43 = vpop.f32.mrf.mxu1 }
 0x1d6   :  { %v283_v45 = vmax.f32 %v279_v42, 0.0 }
 0x1d8   :  { %v284_v46 = vpack.c.bf16 %v283_v45, %v282_v44 }
 0x1da   :  { %533 = vmatmul.mubr.bf16.vlgmr.msra.gmra.mxu0 %v284_v46 }
 0x29a   :  { %v390_v48 = vpop.f32.mrf.mxu0 }
 0x29b   :  { %v391_v49 = vadd.f32 %v446_v47, %v390_v48 }
 0x29c   :  { %v534_v50 = vpop.f32.mrf.mxu0 }
 0x29d   :  { %397 = vmax.xlane.f32.xlu0 %v391_v49 }
 0x29e   :  { %v393_v51 = vpop.f32.mrf.mxu0 }
 0x29f   :  { %v394_v52 = vadd.f32 %v446_v47, %v393_v51 }
 0x2a0   :  { %v535_v53 = vpop.f32.mrf.mxu0 }
 0x2a1   :  { %399 = vmax.xlane.f32.xlu0 %v394_v52 }
 0x326   :  { %v398_v54 = vpop.xlane.xlu0 %397 }
 0x327   :  { %v401_v55 = vsub.f32 %v391_v49, %v398_v54 }
 0x329   :  { %v403_v56 = vmul.f32 1.442695, %v401_v55 }
 0x32a   :  { %v400_v57 = vpop.xlane.xlu0 %399 }
 0x32b   :  { %566 = vpow2.f32 %v403_v56  ;;  %v402_v58 = vsub.f32 %v394_v52, %v400_v57 }
 0x32d   :  { %v405_v59 = vmul.f32 1.442695, %v402_v58 }
 0x32f   :  { %568 = vpow2.f32 %v405_v59 }
 0x338   :  { %v567_v60 = vpop.eup %566 }
 0x339   :  { %407 = vadd.xlane.f32.xlu1 %v567_v60 }
 0x33c   :  { %v569_v61 = vpop.eup %568 }
 0x33d   :  { %409 = vadd.xlane.f32.xlu1 %v569_v61 }
 0x3c2   :  { %v408_v62 = vpop.xlane.xlu1 %407 }
 0x3c3   :  { %570 = vrcp.f32 %v408_v62 }
 0x3c6   :  { %v410_v63 = vpop.xlane.xlu1 %409 }
 0x3c7   :  { %572 = vrcp.f32 %v410_v63 }
 0x3d0   :  { %v571_v0 = vpop.eup %570 }
 0x3d1   :  { %v413_v2 = vmul.f32 %v571_v0, %v567_v60 }
 0x3d4   :  { %v573_v1 = vpop.eup %572 }
 0x3d5   :  { %v414_v3 = vmul.f32 %v573_v1, %v569_v61 }
 0x3d7   :  { %v462_v4 = vpack.c.bf16 %v414_v3, %v413_v2 }
 0x3d9   :  { %463 = vst [vmem:[%s776_s7] sm:$0xff] %v462_v4  }
 0x3da   :  { %429 = vsyncpa [#allocation3], 1 }
 0x3db   :  { %430 = vsyncpa [#allocation5], 1 }
 0x3dc   :  { %431 = vsyncpa [#allocation8], 1 }

</bundles_post_ra>
